<compile_context>
chip_gen: v7x
topology: tpu7x:2x2x1
jax: 0.10.0
libtpu: 0.0.40
codegen_flags: <defaults>
</compile_context>

<pallas_src>
import jax
import jax.numpy as jnp
from jax import lax
from jax.experimental import pallas as pl
from jax.experimental.pallas import tpu as pltpu

H1, H2, H3, HOUT = 512, 256, 128, 1


def _round_up(n, m):
    return (n + m - 1) // m * m


def _mlp_kernel(x_ref, w1_ref, b1_ref, w2_ref, b2_ref,
                w3_ref, b3_ref, w4_ref, b4_ref, o_ref):
    cdt = w1_ref.dtype  # MXU compute dtype (bf16); biases stay f32

    # layer 1: (tb, D) @ (D, 512); x arrives f32 and is cast on the VPU here
    h = jnp.dot(x_ref[...].astype(cdt), w1_ref[...],
                preferred_element_type=jnp.float32)
    h = jnp.maximum(h + b1_ref[...], 0.0)

    # layer 2: (tb, 512) @ (512, 256)
    h = jnp.dot(h.astype(cdt), w2_ref[...], preferred_element_type=jnp.float32)
    h = jnp.maximum(h + b2_ref[...], 0.0)

    # layer 3: (tb, 256) @ (256, 128)
    h = jnp.dot(h.astype(cdt), w3_ref[...], preferred_element_type=jnp.float32)
    h = jnp.maximum(h + b3_ref[...], 0.0)

    # layer 4: contract last dims of (1,128) w4-row and (tb,128) h -> (1, tb)
    # lane-dense row; no materialized (tb,128) transpose on the XLU.
    o = lax.dot_general(w4_ref[...], h.astype(cdt),
                        dimension_numbers=(((1,), (1,)), ((), ())),
                        preferred_element_type=jnp.float32)
    o_ref[...] = (o + b4_ref[...]).astype(o_ref.dtype)


def prepare_params(params, compute_dtype=jnp.bfloat16):
    """Cast/reshape weights ONCE (hoisted out of the per-call forward)."""
    w1, b1, w2, b2, w3, b3, w4, b4 = params
    return (
        w1.astype(compute_dtype),
        b1.reshape(1, H1).astype(jnp.float32),
        w2.astype(compute_dtype),
        b2.reshape(1, H2).astype(jnp.float32),
        w3.astype(compute_dtype),
        b3.reshape(1, H3).astype(jnp.float32),
        w4.reshape(1, H3).astype(compute_dtype),   # (1, 128) row
        b4.reshape(1, 1).astype(jnp.float32),
    )


def potential_network_forward(x, prepared_params, *, tb=1024):
    """x: (B, input_dim) float32. prepared_params: from prepare_params().

    Returns (B,) float32 — matches `.squeeze(-1)`. tb must be a multiple of
    128; arbitrary B is handled by zero-padding to a multiple of the tile.
    """
    w1c, b1r, w2c, b2r, w3c, b3r, w4r, b4r = prepared_params
    B, D = x.shape
    assert tb % 128 == 0, "batch tile must be a multiple of 128"

    # Adaptive tile: at least 128 (lane-dense output), at most tb.
    b128 = _round_up(B, 128)
    tb_eff = min(tb, b128)
    if b128 >= 256:
        # Guarantee >= 2 grid steps so v7x's two TensorCores both get work.
        tb_eff = min(tb_eff, max(128, (b128 // 2 // 128) * 128))
    B_pad = _round_up(B, tb_eff)
    nb = B_pad // tb_eff

    xp = x if B_pad == B else jnp.pad(x, ((0, B_pad - B), (0, 0)))

    full = lambda i: (0, 0)  # weights/biases: single full block, VMEM-resident

    flops = 2 * B_pad * (D * H1 + H1 * H2 + H2 * H3 + H3 * HOUT)
    bytes_accessed = (B_pad * D * 4                              # x (f32 read)
                      + 2 * (D * H1 + H1 * H2 + H2 * H3 + H3)    # bf16 weights
                      + 4 * (H1 + H2 + H3 + 1)                   # f32 biases
                      + B_pad * 4)                               # output
    cost = pl.CostEstimate(flops=flops, transcendentals=0,
                           bytes_accessed=bytes_accessed)

    out = pl.pallas_call(
        _mlp_kernel,
        out_shape=jax.ShapeDtypeStruct((1, B_pad), jnp.float32),
        grid_spec=pltpu.PrefetchScalarGridSpec(
            num_scalar_prefetch=0,
            grid=(nb,),
            in_specs=[
                pl.BlockSpec((tb_eff, D), lambda i: (i, 0)),   # x tile (f32)
                pl.BlockSpec((D, H1), full),                   # W1
                pl.BlockSpec((1, H1), full),                   # b1
                pl.BlockSpec((H1, H2), full),                  # W2
                pl.BlockSpec((1, H2), full),                   # b2
                pl.BlockSpec((H2, H3), full),                  # W3
                pl.BlockSpec((1, H3), full),                   # b3
                pl.BlockSpec((1, H3), full),                   # W4 (row)
                pl.BlockSpec((1, 1), full),                    # b4
            ],
            # Lane-dense output: one (1, tb_eff>=128) row slab per grid step.
            out_specs=pl.BlockSpec((1, tb_eff), lambda i: (0, i)),
        ),
        compiler_params=pltpu.CompilerParams(
            dimension_semantics=("parallel",)),
        cost_estimate=cost,
    )(xp, w1c, b1r, w2c, b2r, w3c, b3r, w4r, b4r)

    return out[0, :B]  # squeeze(-1) + drop batch padding


def init_params(key, input_dim):
    """Deterministic init; shapes mirror the PyTorch module (weights (in, out))."""
    dims = [(input_dim, H1), (H1, H2), (H2, H3), (H3, HOUT)]
    params = []
    for i, (din, dout) in enumerate(dims):
        kw, kb = jax.random.split(jax.random.fold_in(key, i))
        bound = 1.0 / jnp.sqrt(jnp.float32(din))
        w = jax.random.uniform(kw, (din, dout), jnp.float32, -bound, bound)
        b = jax.random.uniform(kb, (1, dout), jnp.float32, -bound, bound)
        params += [w, b]
    return tuple(params)


def _reference_forward_f32(x, params):
    w1, b1, w2, b2, w3, b3, w4, b4 = params
    h = jnp.maximum(x @ w1 + b1, 0.0)
    h = jnp.maximum(h @ w2 + b2, 0.0)
    h = jnp.maximum(h @ w3 + b3, 0.0)
    return (h @ w4 + b4)[:, 0]


def _reference_forward_matched(x, params, compute_dtype=jnp.bfloat16):
    """Reference with the same bf16-operand / f32-accumulate recipe as the kernel."""
    w1, b1, w2, b2, w3, b3, w4, b4 = params
    c = compute_dtype
    h = jnp.dot(x.astype(c), w1.astype(c), preferred_element_type=jnp.float32)
    h = jnp.maximum(h + b1, 0.0)
    h = jnp.dot(h.astype(c), w2.astype(c), preferred_element_type=jnp.float32)
    h = jnp.maximum(h + b2, 0.0)
    h = jnp.dot(h.astype(c), w3.astype(c), preferred_element_type=jnp.float32)
    h = jnp.maximum(h + b3, 0.0)
    o = jnp.dot(h.astype(c), w4.astype(c), preferred_element_type=jnp.float32) + b4
    return o[:, 0]


if __name__ == "__main__":
    key = jax.random.PRNGKey(0)
    input_dim = 64
    kx, kp = jax.random.split(key)
    params = init_params(kp, input_dim)
    prepared = prepare_params(params)   # hoisted one-time cast/reshape

    # Case 1: small, non-multiple-of-128 batch (exercises padding, single step).
    x1 = jax.random.normal(kx, (100, input_dim), jnp.float32)
    y1 = jax.block_until_ready(potential_network_forward(x1, prepared))
    assert y1.shape == (100,)
    assert jnp.allclose(y1, _reference_forward_matched(x1, params),
                        atol=1e-3, rtol=1e-3), "mismatch vs matched ref (B=100)"
    assert jnp.allclose(y1, _reference_forward_f32(x1, params),
                        atol=5e-2, rtol=5e-2), "mismatch vs f32 ref (B=100)"

    # Case 2: batch >= 256 (exercises the >=2-grid-step / multi-tile path).
    x2 = jax.random.normal(jax.random.fold_in(kx, 1), (300, input_dim), jnp.float32)
    y2 = jax.block_until_ready(potential_network_forward(x2, prepared))
    assert y2.shape == (300,)
    assert jnp.allclose(y2, _reference_forward_matched(x2, params),
                        atol=1e-3, rtol=1e-3), "mismatch vs matched ref (B=300)"
    assert jnp.allclose(y2, _reference_forward_f32(x2, params),
                        atol=5e-2, rtol=5e-2), "mismatch vs f32 ref (B=300)"

    print("KERNEL_OK")
</pallas_src>

<mosaic_0001>
module attributes {stable_mosaic.version = 11 : i64} {
  func.func @_mlp_kernel(%arg0: i32, %arg1: memref<128x64xf32, #tpu.memory_space<vmem>>, %arg2: memref<64x512xbf16, #tpu.memory_space<vmem>>, %arg3: memref<1x512xf32, #tpu.memory_space<vmem>>, %arg4: memref<512x256xbf16, #tpu.memory_space<vmem>>, %arg5: memref<1x256xf32, #tpu.memory_space<vmem>>, %arg6: memref<256x128xbf16, #tpu.memory_space<vmem>>, %arg7: memref<1x128xf32, #tpu.memory_space<vmem>>, %arg8: memref<1x128xbf16, #tpu.memory_space<vmem>>, %arg9: memref<1x1xf32, #tpu.memory_space<vmem>>, %arg10: memref<1x128xf32, #tpu.memory_space<vmem>>) attributes {dimension_semantics = [#tpu.dimension_semantics<parallel>], iteration_bounds = array<i64: 1>, scalar_prefetch = 0 : i64, scratch_operands = 0 : i64, tpu.core_type = #tpu.core_type<tc>, window_params = [{transform_indices = @transform_0, window_bounds = array<i64: 128, 64>}, {pipeline_mode = #tpu.pipeline_mode<synchronous>, transform_indices = @transform_1, window_bounds = array<i64: 64, 512>}, {pipeline_mode = #tpu.pipeline_mode<synchronous>, transform_indices = @transform_2, window_bounds = array<i64: 1, 512>}, {pipeline_mode = #tpu.pipeline_mode<synchronous>, transform_indices = @transform_3, window_bounds = array<i64: 512, 256>}, {pipeline_mode = #tpu.pipeline_mode<synchronous>, transform_indices = @transform_4, window_bounds = array<i64: 1, 256>}, {pipeline_mode = #tpu.pipeline_mode<synchronous>, transform_indices = @transform_5, window_bounds = array<i64: 256, 128>}, {pipeline_mode = #tpu.pipeline_mode<synchronous>, transform_indices = @transform_6, window_bounds = array<i64: 1, 128>}, {pipeline_mode = #tpu.pipeline_mode<synchronous>, transform_indices = @transform_7, window_bounds = array<i64: 1, 128>}, {pipeline_mode = #tpu.pipeline_mode<synchronous>, transform_indices = @transform_8, window_bounds = array<i64: 1, 1>}, {transform_indices = @transform_9, window_bounds = array<i64: 1, 128>}]} {
    %c0 = arith.constant 0 : index
    %c0_0 = arith.constant 0 : index
    %0 = vector.load %arg1[%c0, %c0_0] : memref<128x64xf32, #tpu.memory_space<vmem>>, vector<128x64xf32>
    %1 = arith.truncf %0 : vector<128x64xf32> to vector<128x64xbf16>
    %c0_1 = arith.constant 0 : index
    %c0_2 = arith.constant 0 : index
    %2 = vector.load %arg2[%c0_1, %c0_2] : memref<64x512xbf16, #tpu.memory_space<vmem>>, vector<64x512xbf16>
    %cst = arith.constant dense<0.000000e+00> : vector<128x512xf32>
    %3 = tpu.matmul %1, %2, %cst {dimension_numbers = #tpu.dot_dimension_numbers<[1], [0], [0], [1], [0, 0, 1, 1], [], []>} : vector<128x64xbf16>, vector<64x512xbf16>, vector<128x512xf32> -> vector<128x512xf32>
    %c0_3 = arith.constant 0 : index
    %c0_4 = arith.constant 0 : index
    %4 = vector.load %arg3[%c0_3, %c0_4] : memref<1x512xf32, #tpu.memory_space<vmem>>, vector<1x512xf32>
    %5 = vector.broadcast %4 : vector<1x512xf32> to vector<128x512xf32>
    %6 = arith.addf %3, %5 : vector<128x512xf32>
    %cst_5 = arith.constant 0.000000e+00 : f32
    %7 = vector.broadcast %cst_5 : f32 to vector<128x512xf32>
    %8 = arith.maximumf %6, %7 : vector<128x512xf32>
    %9 = arith.truncf %8 : vector<128x512xf32> to vector<128x512xbf16>
    %c0_6 = arith.constant 0 : index
    %c0_7 = arith.constant 0 : index
    %10 = vector.load %arg4[%c0_6, %c0_7] : memref<512x256xbf16, #tpu.memory_space<vmem>>, vector<512x256xbf16>
    %cst_8 = arith.constant dense<0.000000e+00> : vector<128x256xf32>
    %11 = tpu.matmul %9, %10, %cst_8 {dimension_numbers = #tpu.dot_dimension_numbers<[1], [0], [0], [1], [0, 0, 1, 1], [], []>} : vector<128x512xbf16>, vector<512x256xbf16>, vector<128x256xf32> -> vector<128x256xf32>
    %c0_9 = arith.constant 0 : index
    %c0_10 = arith.constant 0 : index
    %12 = vector.load %arg5[%c0_9, %c0_10] : memref<1x256xf32, #tpu.memory_space<vmem>>, vector<1x256xf32>
    %13 = vector.broadcast %12 : vector<1x256xf32> to vector<128x256xf32>
    %14 = arith.addf %11, %13 : vector<128x256xf32>
    %cst_11 = arith.constant 0.000000e+00 : f32
    %15 = vector.broadcast %cst_11 : f32 to vector<128x256xf32>
    %16 = arith.maximumf %14, %15 : vector<128x256xf32>
    %17 = arith.truncf %16 : vector<128x256xf32> to vector<128x256xbf16>
    %c0_12 = arith.constant 0 : index
    %c0_13 = arith.constant 0 : index
    %18 = vector.load %arg6[%c0_12, %c0_13] : memref<256x128xbf16, #tpu.memory_space<vmem>>, vector<256x128xbf16>
    %cst_14 = arith.constant dense<0.000000e+00> : vector<128x128xf32>
    %19 = tpu.matmul %17, %18, %cst_14 {dimension_numbers = #tpu.dot_dimension_numbers<[1], [0], [0], [1], [0, 0, 1, 1], [], []>} : vector<128x256xbf16>, vector<256x128xbf16>, vector<128x128xf32> -> vector<128x128xf32>
    %c0_15 = arith.constant 0 : index
    %c0_16 = arith.constant 0 : index
    %20 = vector.load %arg7[%c0_15, %c0_16] : memref<1x128xf32, #tpu.memory_space<vmem>>, vector<1x128xf32>
    %21 = vector.broadcast %20 : vector<1x128xf32> to vector<128x128xf32>
    %22 = arith.addf %19, %21 : vector<128x128xf32>
    %cst_17 = arith.constant 0.000000e+00 : f32
    %23 = vector.broadcast %cst_17 : f32 to vector<128x128xf32>
    %24 = arith.maximumf %22, %23 : vector<128x128xf32>
    %c0_18 = arith.constant 0 : index
    %c0_19 = arith.constant 0 : index
    %25 = vector.load %arg8[%c0_18, %c0_19] : memref<1x128xbf16, #tpu.memory_space<vmem>>, vector<1x128xbf16>
    %26 = arith.truncf %24 : vector<128x128xf32> to vector<128x128xbf16>
    %cst_20 = arith.constant dense<0.000000e+00> : vector<1x128xf32>
    %27 = tpu.matmul %25, %26, %cst_20 {dimension_numbers = #tpu.dot_dimension_numbers<[1], [1], [0], [0], [0, 0, 1, 0], [], []>} : vector<1x128xbf16>, vector<128x128xbf16>, vector<1x128xf32> -> vector<1x128xf32>
    %c0_21 = arith.constant 0 : index
    %c0_22 = arith.constant 0 : index
    %28 = vector.load %arg9[%c0_21, %c0_22] : memref<1x1xf32, #tpu.memory_space<vmem>>, vector<1x1xf32>
    %29 = vector.broadcast %28 : vector<1x1xf32> to vector<1x128xf32>
    %30 = arith.addf %27, %29 : vector<1x128xf32>
    %c0_23 = arith.constant 0 : index
    %c0_24 = arith.constant 0 : index
    %31 = vector.load %arg10[%c0_23, %c0_24] : memref<1x128xf32, #tpu.memory_space<vmem>>, vector<1x128xf32>
    tpu.vector_store %arg10[%c0_23, %c0_24], %30 {strides = array<i32>} : memref<1x128xf32, #tpu.memory_space<vmem>>, vector<1x128xf32>,
    return
  }
  func.func @transform_0(%arg0: i32) -> (i32, i32) {
    %c0_i32 = arith.constant 0 : i32
    %c0_i32_0 = arith.constant 0 : i32
    return %arg0, %c0_i32 : i32, i32
  }
  func.func @transform_1(%arg0: i32) -> (i32, i32) {
    %c0_i32 = arith.constant 0 : i32
    %c0_i32_0 = arith.constant 0 : i32
    %c0_i32_1 = arith.constant 0 : i32
    return %c0_i32, %c0_i32_0 : i32, i32
  }
  func.func @transform_2(%arg0: i32) -> (i32, i32) {
    %c0_i32 = arith.constant 0 : i32
    %c0_i32_0 = arith.constant 0 : i32
    %c0_i32_1 = arith.constant 0 : i32
    return %c0_i32, %c0_i32_0 : i32, i32
  }
  func.func @transform_3(%arg0: i32) -> (i32, i32) {
    %c0_i32 = arith.constant 0 : i32
    %c0_i32_0 = arith.constant 0 : i32
    %c0_i32_1 = arith.constant 0 : i32
    return %c0_i32, %c0_i32_0 : i32, i32
  }
  func.func @transform_4(%arg0: i32) -> (i32, i32) {
    %c0_i32 = arith.constant 0 : i32
    %c0_i32_0 = arith.constant 0 : i32
    %c0_i32_1 = arith.constant 0 : i32
    return %c0_i32, %c0_i32_0 : i32, i32
  }
  func.func @transform_5(%arg0: i32) -> (i32, i32) {
    %c0_i32 = arith.constant 0 : i32
    %c0_i32_0 = arith.constant 0 : i32
    %c0_i32_1 = arith.constant 0 : i32
    return %c0_i32, %c0_i32_0 : i32, i32
  }
  func.func @transform_6(%arg0: i32) -> (i32, i32) {
    %c0_i32 = arith.constant 0 : i32
    %c0_i32_0 = arith.constant 0 : i32
    %c0_i32_1 = arith.constant 0 : i32
    return %c0_i32, %c0_i32_0 : i32, i32
  }
  func.func @transform_7(%arg0: i32) -> (i32, i32) {
    %c0_i32 = arith.constant 0 : i32
    %c0_i32_0 = arith.constant 0 : i32
    %c0_i32_1 = arith.constant 0 : i32
    return %c0_i32, %c0_i32_0 : i32, i32
  }
  func.func @transform_8(%arg0: i32) -> (i32, i32) {
    %c0_i32 = arith.constant 0 : i32
    %c0_i32_0 = arith.constant 0 : i32
    %c0_i32_1 = arith.constant 0 : i32
    return %c0_i32, %c0_i32_0 : i32, i32
  }
  func.func @transform_9(%arg0: i32) -> (i32, i32) {
    %c0_i32 = arith.constant 0 : i32
    %c0_i32_0 = arith.constant 0 : i32
    return %c0_i32, %arg0 : i32, i32
  }
}

</mosaic_0001>

<bundles_post_ra>
// kernel: tpu_custom_call.1
= control target key start
LH: loop header
LB: loop body
LE: loop exit
PB: predicated region body
PF: predicated region fallthrough
CT: control target
= control target key end

     0   :  { %s2459_s0 = inlined_call_operand.vmem [shape: f32[128,64], index: 0, kind: input, shape index: {}]   ;;  %s2460_s1 = inlined_call_operand.vmem [shape: bf16[64,512], index: 1, kind: input, shape index: {}]   ;;  %s2461_s2 = inlined_call_operand.vmem [shape: f32[1,512], index: 2, kind: input, shape index: {}]   ;;  %s2462_s3 = inlined_call_operand.hbm [shape: bf16[512,256], index: 3, kind: input, shape index: {}]   ;;  %s2463_s4 = inlined_call_operand.vmem [shape: f32[1,256], index: 4, kind: input, shape index: {}]   ;;  %s2464_s5 = inlined_call_operand.hbm [shape: bf16[256,128], index: 5, kind: input, shape index: {}]   ;;  %s2465_s6 = inlined_call_operand.vmem [shape: f32[1,128], index: 6, kind: input, shape index: {}]   ;;  %s2466_s7 = inlined_call_operand.vmem [shape: bf16[1,128], index: 7, kind: input, shape index: {}]   ;;  %s2467_s8 = inlined_call_operand.<no memory space> [shape: f32[1,1], index: 8, kind: input, shape index: {}]   ;;  %s2468_s9 = inlined_call_operand.hbm [shape: f32[1,128], index: 9, kind: output, shape index: {}]  }
   0x1   :  { %v14_v0 = vstv %s2467_s8 }
   0x2   :  { %15 = vst [vmem:[#allocation2] sm:$0x1] %v14_v0 }
   0x3   :  { %16 = vsyncpa [#allocation4], 0 }
   0x4   :  { %17 = vsyncpa [#allocation7], 0 }
   0x5   :  { %18 = vsyncpa [#allocation5], 0  ;;  %s2036_s11 = smov [#allocation3]   ;;  %s1964_s15 = scalar_lea.hbm %s2462_s3, 8192 }
   0x6   :  { %s30_s12 = sshll.u32 %s2036_s11, 4  ;;  %p1965_p0 = scmp.ne.s32.totalorder %s2462_s3, %s1964_s15  ;;  %s31_s12 = int_to_ptr.vmem [resolvable:$true] %s30_s12 }
   0x7   :  { %p1968_p1 = scmp.lt.u32.totalorder %s1964_s15, %s2462_s3 }
   0x9   :  { %p1970_p2 = pnand %p1968_p1, %p1965_p0 }
   0xb   :  { %1973 = shalt.err (!%p1970_p2)
}
   0xc   :  { %s1974_s8 = scalar_lea.vmem %s31_s12, 8192  ;;  %p1979_p4 = scmp.lt.s32.totalorder %s31_s12, %s31_s12 }
   0xd   :  { %p1975_p3 = scmp.ne.s32.totalorder %s31_s12, %s1974_s8  ;;  %p1980_p5 = scmp.lt.s32.totalorder %s1974_s8, %s1974_s8 }
   0xf   :  { %p1981_p6 = por %p1980_p5, %p1979_p4 }
  0x11   :  { %p1982_p7 = pnand %p1981_p6, %p1975_p3 }
  0x13   :  { %1985 = shalt.err (!%p1982_p7)
}
  0x14   :  { %s2037_s20 = smov 128   ;;  %s2038_s21 = smov 8  }
  0x15   :  { %36 = dma.hbm_to_vmem [thread:$0]  %s2462_s3, 8192, %s31_s12, [#allocation4], %s2037_s20, %s2037_s20, %s2038_s21  }
  0x16   :  { %s2039_s24 = smov [#allocation6]   ;;  %s1986_s28 = scalar_lea.hbm %s2464_s5, 2048 }
  0x17   :  { %s44_s25 = sshll.u32 %s2039_s24, 4  ;;  %p1987_p8 = scmp.ne.s32.totalorder %s2464_s5, %s1986_s28  ;;  %s45_s25 = int_to_ptr.vmem [resolvable:$true] %s44_s25 }
  0x18   :  { %p1990_p9 = scmp.lt.u32.totalorder %s1986_s28, %s2464_s5 }
  0x1a   :  { %p1992_p10 = pnand %p1990_p9, %p1987_p8 }
  0x1c   :  { %1995 = shalt.err (!%p1992_p10)
}
  0x1d   :  { %s1996_s13 = scalar_lea.vmem %s45_s25, 2048  ;;  %p2001_p12 = scmp.lt.s32.totalorder %s45_s25, %s45_s25 }
  0x1e   :  { %p1997_p11 = scmp.ne.s32.totalorder %s45_s25, %s1996_s13  ;;  %p2002_p13 = scmp.lt.s32.totalorder %s1996_s13, %s1996_s13 }
  0x20   :  { %p2003_p0 = por %p2002_p13, %p2001_p12 }
  0x22   :  { %p2004_p1 = pnand %p2003_p0, %p1997_p11 }
  0x24   :  { %2007 = shalt.err (!%p2004_p1)
}
  0x25   :  { %s2040_s3 = smov 64   ;;  %s2041_s12 = smov 4  }
  0x26   :  { %50 = dma.hbm_to_vmem [thread:$0]  %s2464_s5, 2048, %s45_s25, [#allocation7], %s2040_s3, %s2040_s3, %s2041_s12  }
  0x27   :  { %2030 = dma.done.wait [#allocation4], 8192  }
  0x28   :  { %2031 = vsyncadd [#allocation4], 4294959104 }
  0x29   :  { %2032 = dma.done.wait [#allocation7], 2048  }
  0x2a   :  { %2033 = vsyncadd [#allocation7], 4294965248  ;;  %v2042_v1 = vmov 0   ;;  %v1828_v2 = vld [vmem:[%s2460_s1 + $0x4] ss:$16 sps:$4 sm:$0xff]   ;;  %v65_v13 = vld [vmem:[%s2459_s0 + $0x8] sm:$0xff] }
  0x2b   :  { %263 = vmatprep.mubr.bf16.mxu0 %v2042_v1  ;;  %376 = vmatprep.mubr.bf16.mxu1 %v2042_v1  ;;  %v1830_v3 = vld [vmem:[%s2460_s1] ss:$16 sps:$4 sm:$0xff]   ;;  %v1831_v4 = vld [vmem:[%s2460_s1 + $0x24] ss:$16 sps:$4 sm:$0xff]   ;;  %v1840_v11 = vld [vmem:[%s2460_s1 + $0xc] ss:$16 sps:$4 sm:$0xff]  }
  0x2c   :  { %1827 = vset.pattern.permute.xlu0 %v2042_v1  ;;  %231 = vmatprep.subr.bf16.mxu0 %v1828_v2  ;;  %v1833_v5 = vld [vmem:[%s2460_s1 + $0x20] ss:$16 sps:$4 sm:$0xff]   ;;  %v1834_v6 = vld [vmem:[%s2460_s1 + $0x44] ss:$16 sps:$4 sm:$0xff]   ;;  %v1842_v12 = vld [vmem:[%s2460_s1 + $0x8] ss:$16 sps:$4 sm:$0xff]  }
  0x2d   :  { %232 = vmatpush1.bf16.msra.mxu0 %v1830_v3  ;;  %v1836_v7 = vld [vmem:[%s2460_s1 + $0x40] ss:$16 sps:$4 sm:$0xff]   ;;  %v1837_v8 = vld [vmem:[%s2460_s1 + $0x64] ss:$16 sps:$4 sm:$0xff]   ;;  %344 = vmatprep.subr.bf16.mxu1 %v1840_v11  ;;  %v1843_v14 = vld [vmem:[%s2460_s1 + $0x2c] ss:$16 sps:$4 sm:$0xff]  }
  0x2e   :  { %233 = vmatprep.subr.bf16.mxu0 %v1831_v4  ;;  %v1839_v9 = vld [vmem:[%s2460_s1 + $0x60] ss:$16 sps:$4 sm:$0xff]   ;;  %345 = vmatpush1.bf16.msra.mxu1 %v1842_v12  ;;  %v1845_v15 = vld [vmem:[%s2460_s1 + $0x28] ss:$16 sps:$4 sm:$0xff]   ;;  %v1846_v17 = vld [vmem:[%s2460_s1 + $0x4c] ss:$16 sps:$4 sm:$0xff]   ;;  %v106_v12 = vlaneseq }
  0x2f   :  { %v64_v10 = vld [vmem:[%s2459_s0] sm:$0xff]  ;;  %346 = vmatprep.subr.bf16.mxu1 %v1843_v14  ;;  %vm206_vm0 = vcmask 523264   ;;  %v1848_v18 = vld [vmem:[%s2460_s1 + $0x48] ss:$16 sps:$4 sm:$0xff]   ;;  %v66_v20 = vld [vmem:[%s2459_s0 + $0x10] sm:$0xff]  ;;  %vm2044_vm1 = vmmov 0  }
  0x30   :  { %v80_v16 = vpack.c.bf16 %v65_v13, %v64_v10  ;;  %v1852_v19 = vld [vmem:[#allocation3] ss:$8 sps:$4 sm:$0xff]   ;;  %v1854_v21 = vld [vmem:[#allocation3 + $0x4] ss:$8 sps:$4 sm:$0xff]   ;;  %v1857_v23 = vld [vmem:[#allocation3 + $0x14] ss:$8 sps:$4 sm:$0xff]  }
  0x31   :  { %234 = vmatpush1.bf16.msra.mxu0 %v1833_v5  ;;  %v1849_v22 = vld [vmem:[%s2460_s1 + $0x6c] ss:$16 sps:$4 sm:$0xff]   ;;  %v1851_v25 = vld [vmem:[%s2460_s1 + $0x68] ss:$16 sps:$4 sm:$0xff]   ;;  %v68_v31 = vld [vmem:[%s2459_s0 + $0x20] sm:$0xff]  ;;  %v2252_v13 = vshrl.u32 %v106_v12, 7 }
  0x32   :  { %235 = vmatprep.subr.bf16.mxu0 %v1834_v6  ;;  %347 = vmatpush1.bf16.msra.mxu1 %v1845_v15  ;;  %v67_v24 = vld [vmem:[%s2459_s0 + $0x18] sm:$0xff]  ;;  %v1860_v27 = vld [vmem:[#allocation3 + $0x24] ss:$8 sps:$4 sm:$0xff]   ;;  %v1858_v29 = vld [vmem:[#allocation3 + $0x20] ss:$8 sps:$4 sm:$0xff]   ;;  %s2045_s11 = smov [#allocation8]  }
  0x33   :  { %348 = vmatprep.subr.bf16.mxu1 %v1846_v17  ;;  %v1855_v26 = vld [vmem:[#allocation3 + $0x10] ss:$8 sps:$4 sm:$0xff]   ;;  %v81_v28 = vpack.c.bf16 %v67_v24, %v66_v20  ;;  %v1863_v30 = vld [vmem:[#allocation3 + $0x34] ss:$8 sps:$4 sm:$0xff]   ;;  %v69_v32 = vld [vmem:[%s2459_s0 + $0x28] sm:$0xff]  ;;  %v2255_v14 = vsub.s32 0, %v2252_v13 }
  0x34   :  { %v1861_v33 = vld [vmem:[#allocation3 + $0x30] ss:$8 sps:$4 sm:$0xff]   ;;  %v1866_v34 = vld [vmem:[#allocation3 + $0x44] ss:$8 sps:$4 sm:$0xff]   ;;  %v82_v35 = vpack.c.bf16 %v69_v32, %v68_v31  ;;  %v1864_v36 = vld [vmem:[#allocation3 + $0x40] ss:$8 sps:$4 sm:$0xff]  }
  0x35   :  { %236 = vmatpush1.bf16.msra.mxu0 %v1836_v7  ;;  %v1869_v37 = vld [vmem:[#allocation3 + $0x54] ss:$8 sps:$4 sm:$0xff]   ;;  %v1867_v40 = vld [vmem:[#allocation3 + $0x50] ss:$8 sps:$4 sm:$0xff]   ;;  %v1872_v41 = vld [vmem:[#allocation3 + $0x64] ss:$8 sps:$4 sm:$0xff]  }
  0x36   :  { %237 = vmatprep.subr.bf16.mxu0 %v1837_v8  ;;  %349 = vmatpush1.bf16.msra.mxu1 %v1848_v18  ;;  %v70_v38 = vld [vmem:[%s2459_s0 + $0x30] sm:$0xff]  ;;  %v71_v39 = vld [vmem:[%s2459_s0 + $0x38] sm:$0xff]  ;;  %v1870_v43 = vld [vmem:[#allocation3 + $0x60] ss:$8 sps:$4 sm:$0xff]   ;;  %v112_v15 = vsub.s32 1, %v2252_v13  ;;  %s1537_s13 = sshll.u32 %s2045_s11, 4  ;;  %s1538_s13 = int_to_ptr.vmem [resolvable:$true] %s1537_s13 }
  0x37   :  { %350 = vmatprep.subr.bf16.mxu1 %v1849_v22  ;;  %v83_v42 = vpack.c.bf16 %v71_v39, %v70_v38  ;;  %v1875_v44 = vld [vmem:[#allocation3 + $0x74] ss:$8 sps:$4 sm:$0xff]   ;;  %v73_v46 = vld [vmem:[%s2459_s0 + $0x48] sm:$0xff]  ;;  %v1873_v47 = vld [vmem:[#allocation3 + $0x70] ss:$8 sps:$4 sm:$0xff]   ;;  %s2008_s3 = scalar_lea.vmem %s1538_s13, 16  ;;  %p2013_p3 = scmp.lt.s32.totalorder %s1538_s13, %s1538_s13 }
  0x38   :  { %v72_v45 = vld [vmem:[%s2459_s0 + $0x40] sm:$0xff]  ;;  %v74_v52 = vld [vmem:[%s2459_s0 + $0x50] sm:$0xff]  ;;  %v75_v53 = vld [vmem:[%s2459_s0 + $0x58] sm:$0xff]  ;;  %p2009_p2 = scmp.ne.s32.totalorder %s1538_s13, %s2008_s3  ;;  %s2012_s12 = scalar_lea.vmem %s1538_s13, 32 }
  0x39   :  { %238 = vmatpush1.bf16.msra.mxu0 %v1839_v9  ;;  %v1878_v48 = vld [vmem:[#allocation3 + $0x84] ss:$8 sps:$4 sm:$0xff]   ;;  %v84_v49 = vpack.c.bf16 %v73_v46, %v72_v45  ;;  %v1876_v50 = vld [vmem:[#allocation3 + $0x80] ss:$8 sps:$4 sm:$0xff]   ;;  %v1881_v51 = vld [vmem:[#allocation3 + $0x94] ss:$8 sps:$4 sm:$0xff]   ;;  %v85_v56 = vpack.c.bf16 %v75_v53, %v74_v52  ;;  %p2014_p4 = scmp.lt.s32.totalorder %s2012_s12, %s2008_s3 }
  0x3a   :  { %949 = vmatprep.subr.bf16.mxu0 %v1854_v21  ;;  %351 = vmatpush1.bf16.msra.mxu1 %v1851_v25  ;;  %v1879_v54 = vld [vmem:[#allocation3 + $0x90] ss:$8 sps:$4 sm:$0xff]   ;;  %v1884_v55 = vld [vmem:[#allocation3 + $0xa4] ss:$8 sps:$4 sm:$0xff]   ;;  %v1882_v57 = vld [vmem:[#allocation3 + $0xa0] ss:$8 sps:$4 sm:$0xff]  }
  0x3b   :  { %v1887_v58 = vld [vmem:[#allocation3 + $0xb4] ss:$8 sps:$4 sm:$0xff]   ;;  %v77_v60 = vld [vmem:[%s2459_s0 + $0x68] sm:$0xff]  ;;  %v1885_v61 = vld [vmem:[#allocation3 + $0xb0] ss:$8 sps:$4 sm:$0xff]   ;;  %v116_v25 = vsub.s32 2, %v2252_v13  ;;  %p2015_p5 = por %p2014_p4, %p2013_p3 }
  0x3c   :  { %1563 = vmatmul.mubr.msk.bf16.vlgmr.msra.gmra.mrb[0].mxu0 %vm206_vm0, %v80_v16  ;;  %v76_v59 = vld [vmem:[%s2459_s0 + $0x60] sm:$0xff]  ;;  %v78_v3 = vld [vmem:[%s2459_s0 + $0x70] sm:$0xff]  ;;  %v79_v4 = vld [vmem:[%s2459_s0 + $0x78] sm:$0xff] }
  0x3d   :  { %273 = vmatprep.mubr.bf16.mxu0 %v2042_v1  ;;  %950 = vmatpush1.bf16.msra.mxu0 %v1852_v19  ;;  %v1890_v62 = vld [vmem:[#allocation3 + $0xc4] ss:$8 sps:$4 sm:$0xff]   ;;  %v86_v63 = vpack.c.bf16 %v77_v60, %v76_v59  ;;  %v1888_v0 = vld [vmem:[#allocation3 + $0xc0] ss:$8 sps:$4 sm:$0xff]   ;;  %v1893_v2 = vld [vmem:[#allocation3 + $0xd4] ss:$8 sps:$4 sm:$0xff]   ;;  %v87_v6 = vpack.c.bf16 %v79_v4, %v78_v3  ;;  %p2016_p6 = pnand %p2015_p5, %p2009_p2 }
  0x3e   :  { %951 = vmatprep.subr.bf16.mxu0 %v1857_v23  ;;  %1571 = vmatmul.mubr.msk.bf16.vlgmr.msra.gmra.mrb[0].mxu1 %vm206_vm0, %v80_v16  ;;  %v1891_v5 = vld [vmem:[#allocation3 + $0xd0] ss:$8 sps:$4 sm:$0xff]   ;;  %v1896_v7 = vld [vmem:[#allocation3 + $0xe4] ss:$8 sps:$4 sm:$0xff]   ;;  %v1894_v8 = vld [vmem:[#allocation3 + $0xe0] ss:$8 sps:$4 sm:$0xff]  }
  0x3f   :  { %386 = vmatprep.mubr.bf16.mxu1 %v2042_v1  ;;  %v1899_v9 = vld [vmem:[#allocation3 + $0xf4] ss:$8 sps:$4 sm:$0xff]   ;;  %v1897_v10 = vld [vmem:[#allocation3 + $0xf0] ss:$8 sps:$4 sm:$0xff]   ;;  %v1902_v11 = vld [vmem:[#allocation3 + $0x104] ss:$8 sps:$4 sm:$0xff]  }
  0x40   :  { %v1952_v38 = vld [vmem:[#allocation6 + $0x50] sm:$0xff]   ;;  %v1906_v12 = vld [vmem:[#allocation3 + $0x120] ss:$8 sps:$4 sm:$0xff]  }
  0x41   :  { %952 = vmatpush1.bf16.msra.mxu0 %v1855_v26  ;;  %v1948_v26 = vld [vmem:[#allocation6 + $0x40] sm:$0xff]   ;;  %v1905_v45 = vld [vmem:[#allocation3 + $0x114] ss:$8 sps:$4 sm:$0xff]  }
  0x42   :  { %953 = vmatprep.subr.bf16.mxu0 %v1860_v27  ;;  %v1949_v27 = vld [vmem:[#allocation6] sm:$0xff]   ;;  %1660 = vmatprep.subr.bf16.mxu1 %v1948_v26 }
  0x43   :  { %1661 = vmatpush3.bf16.msra.mxu1 %v1949_v27  ;;  %v1957_v26 = vld [vmem:[#allocation6 + $0x20] sm:$0xff]  }
  0x44   :  { %1564 = vmatmul.mubr.msk.bf16.gmra.mrb[4].mxu0 %vm206_vm0, %v81_v28 }
  0x45   :  { %283 = vmatprep.mubr.bf16.mxu0 %v2042_v1  ;;  %954 = vmatpush1.bf16.msra.mxu0 %v1858_v29 }
  0x46   :  { %955 = vmatprep.subr.bf16.mxu0 %v1863_v30  ;;  %1572 = vmatmul.mubr.msk.bf16.gmra.mrb[4].mxu1 %vm206_vm0, %v81_v28  ;;  %v1950_v28 = vld [vmem:[#allocation6 + $0x48] sm:$0xff]   ;;  %v120_v30 = vsub.s32 3, %v2252_v13 }
  0x47   :  { %396 = vmatprep.mubr.bf16.mxu1 %v2042_v1  ;;  %1662 = vmatprep.subr.bf16.mxu1 %v1950_v28 }
  0x49   :  { %956 = vmatpush1.bf16.msra.mxu0 %v1861_v33 }
  0x4a   :  { %957 = vmatprep.subr.bf16.mxu0 %v1866_v34 }
  0x4c   :  { %1565 = vmatmul.mubr.msk.bf16.gmra.mrb[8].mxu0 %vm206_vm0, %v82_v35 }
  0x4d   :  { %293 = vmatprep.mubr.bf16.mxu0 %v2042_v1  ;;  %958 = vmatpush1.bf16.msra.mxu0 %v1864_v36 }
  0x4e   :  { %959 = vmatprep.subr.bf16.mxu0 %v1869_v37  ;;  %1573 = vmatmul.mubr.msk.bf16.gmra.mrb[8].mxu1 %vm206_vm0, %v82_v35  ;;  %v1951_v35 = vld [vmem:[#allocation6 + $0x8] sm:$0xff]  }
  0x4f   :  { %406 = vmatprep.mubr.bf16.mxu1 %v2042_v1  ;;  %1663 = vmatpush3.bf16.msra.mxu1 %v1951_v35 }
  0x50   :  { %1664 = vmatprep.subr.bf16.mxu1 %v1952_v38 }
  0x51   :  { %960 = vmatpush1.bf16.msra.mxu0 %v1867_v40 }
  0x52   :  { %961 = vmatprep.subr.bf16.mxu0 %v1872_v41  ;;  %v1900_v41 = vld [vmem:[#allocation3 + $0x100] ss:$8 sps:$4 sm:$0xff]  }
  0x54   :  { %1566 = vmatmul.mubr.msk.bf16.gmra.mrb[12].mxu0 %vm206_vm0, %v83_v42 }
  0x55   :  { %303 = vmatprep.mubr.bf16.mxu0 %v2042_v1  ;;  %962 = vmatpush1.bf16.msra.mxu0 %v1870_v43 }
  0x56   :  { %963 = vmatprep.subr.bf16.mxu0 %v1875_v44  ;;  %1574 = vmatmul.mubr.msk.bf16.gmra.mrb[12].mxu1 %vm206_vm0, %v83_v42 }
  0x57   :  { %416 = vmatprep.mubr.bf16.mxu1 %v2042_v1 }
  0x59   :  { %964 = vmatpush1.bf16.msra.mxu0 %v1873_v47 }
  0x5a   :  { %965 = vmatprep.subr.bf16.mxu0 %v1878_v48 }
  0x5c   :  { %1567 = vmatmul.mubr.msk.bf16.gmra.mrb[16].mxu0 %vm206_vm0, %v84_v49 }
  0x5d   :  { %313 = vmatprep.mubr.bf16.mxu0 %v2042_v1  ;;  %966 = vmatpush1.bf16.msra.mxu0 %v1876_v50 }
  0x5e   :  { %967 = vmatprep.subr.bf16.mxu0 %v1881_v51  ;;  %1575 = vmatmul.mubr.msk.bf16.gmra.mrb[16].mxu1 %vm206_vm0, %v84_v49  ;;  %v1953_v49 = vld [vmem:[#allocation6 + $0x10] sm:$0xff]  }
  0x5f   :  { %426 = vmatprep.mubr.bf16.mxu1 %v2042_v1  ;;  %1665 = vmatpush3.bf16.msra.mxu1 %v1953_v49 }
  0x61   :  { %968 = vmatpush1.bf16.msra.mxu0 %v1879_v54  ;;  %v1954_v54 = vld [vmem:[#allocation6 + $0x58] sm:$0xff]  }
  0x62   :  { %969 = vmatprep.subr.bf16.mxu0 %v1884_v55  ;;  %1666 = vmatprep.subr.bf16.mxu1 %v1954_v54  ;;  %v1912_v54 = vld [vmem:[#allocation3 + $0x140] ss:$8 sps:$4 sm:$0xff]  }
  0x64   :  { %1568 = vmatmul.mubr.msk.bf16.gmra.mrb[20].mxu0 %vm206_vm0, %v85_v56 }
  0x65   :  { %323 = vmatprep.mubr.bf16.mxu0 %v2042_v1  ;;  %970 = vmatpush1.bf16.msra.mxu0 %v1882_v57 }
  0x66   :  { %971 = vmatprep.subr.bf16.mxu0 %v1887_v58  ;;  %1576 = vmatmul.mubr.msk.bf16.gmra.mrb[20].mxu1 %vm206_vm0, %v85_v56  ;;  %v1903_v56 = vld [vmem:[#allocation3 + $0x110] ss:$8 sps:$4 sm:$0xff]  }
  0x67   :  { %436 = vmatprep.mubr.bf16.mxu1 %v2042_v1 }
  0x69   :  { %972 = vmatpush1.bf16.msra.mxu0 %v1885_v61  ;;  %v1908_v61 = vld [vmem:[#allocation3 + $0x124] ss:$8 sps:$4 sm:$0xff]  }
  0x6a   :  { %973 = vmatprep.subr.bf16.mxu0 %v1890_v62 }
  0x6c   :  { %1569 = vmatmul.mubr.msk.bf16.gmra.mrb[24].mxu0 %vm206_vm0, %v86_v63 }
  0x6d   :  { %333 = vmatprep.mubr.bf16.mxu0 %v2042_v1  ;;  %974 = vmatpush1.bf16.msra.mxu0 %v1888_v0 }
  0x6e   :  { %975 = vmatprep.subr.bf16.mxu0 %v1893_v2  ;;  %1577 = vmatmul.mubr.msk.bf16.gmra.mrb[24].mxu1 %vm206_vm0, %v86_v63 }
  0x6f   :  { %446 = vmatprep.mubr.bf16.mxu1 %v2042_v1  ;;  %v104_v1 = vld [vmem:[%s2461_s2] sm:$0xf] }
  0x70   :  { %v2262_v16 = vrot.slane %v104_v1, %v2255_v14  ;;  %v2266_v17 = vrot.slane %v104_v1, %v112_v15  ;;  %v2274_v37 = vrot.slane %v104_v1, %v116_v25  ;;  %v2276_v42 = vrot.slane %v104_v1, %v120_v30 }
  0x71   :  { %976 = vmatpush1.bf16.msra.mxu0 %v1891_v5 }
  0x72   :  { %977 = vmatprep.subr.bf16.mxu0 %v1896_v7 }
  0x74   :  { %1570 = vmatmul.mubr.msk.bf16.gmra.mrb[28].mxu0 %vm206_vm0, %v87_v6 }
  0x75   :  { %978 = vmatpush1.bf16.msra.mxu0 %v1894_v8 }
  0x76   :  { %1578 = vmatmul.mubr.msk.bf16.gmra.mrb[28].mxu1 %vm206_vm0, %v87_v6  ;;  %979 = vmatprep.subr.bf16.mxu0 %v1899_v9  ;;  %v1955_v6 = vld [vmem:[#allocation6 + $0x18] sm:$0xff]   ;;  %v1956_v9 = vld [vmem:[#allocation6 + $0x60] sm:$0xff]  }
  0x77   :  { %1667 = vmatpush3.bf16.msra.mxu1 %v1955_v6 }
  0x78   :  { %1668 = vmatprep.subr.bf16.mxu1 %v1956_v9 }
  0x79   :  { %980 = vmatpush1.bf16.msra.mxu0 %v1897_v10 }
  0x7a   :  { %1062 = vmatprep.subr.bf16.mxu0 %v1902_v11 }
  0x7b   :  { %1669 = vmatpush3.bf16.msra.mxu1 %v1957_v26 }
 0x10f   :  { %v265_v18 = vpop.f32.mrb[0].mxu0 }
 0x110   :  { %v266_v19 = vadd.f32 %v265_v18, %v2262_v16  ;;  %v267_v20 = vpop.f32.mrb[1].mxu0 }
 0x111   :  { %v268_v21 = vadd.f32 %v267_v20, %v2266_v17  ;;  %v269_v22 = vpop.f32.mrb[2].mxu0  ;;  %v378_v48 = vpop.f32.mrb[0].mxu1  ;;  %v1911_v20 = vld [vmem:[#allocation3 + $0x134] ss:$8 sps:$4 sm:$0xff]  }
 0x112   :  { %v270_v23 = vadd.f32 %v269_v22, %v2262_v16  ;;  %v271_v24 = vpop.f32.mrb[3].mxu0  ;;  %v457_v31 = vmax.f32 %v266_v19, 0.0  ;;  %v379_v52 = vadd.f32 %v378_v48, %v2274_v37  ;;  %v380_v53 = vpop.f32.mrb[1].mxu1  ;;  %v1959_v48 = vld [vmem:[#allocation6 + $0x28] sm:$0xff]  }
 0x113   :  { %v272_v29 = vadd.f32 %v271_v24, %v2266_v17  ;;  %v458_v33 = vmax.f32 %v268_v21, 0.0  ;;  %v381_v57 = vadd.f32 %v380_v53, %v2276_v42  ;;  %v382_v58 = vpop.f32.mrb[2].mxu1 }
 0x114   :  { %v461_v32 = vmax.f32 %v270_v23, 0.0  ;;  %v459_v62 = vmax.f32 %v379_v52, 0.0  ;;  %v383_v63 = vadd.f32 %v382_v58, %v2274_v37  ;;  %v384_v0 = vpop.f32.mrb[3].mxu1  ;;  %v1917_v58 = vld [vmem:[#allocation3 + $0x154] ss:$8 sps:$4 sm:$0xff]  }
 0x115   :  { %v462_v34 = vmax.f32 %v272_v29, 0.0  ;;  %v460_v4 = vmax.f32 %v381_v57, 0.0  ;;  %v385_v5 = vadd.f32 %v384_v0, %v2276_v42  ;;  %v1961_v0 = vld [vmem:[#allocation6 + $0x30] sm:$0xff]  }
 0x116   :  { %v521_v36 = vpack.c.bf16 %v461_v32, %v457_v31  ;;  %v463_v8 = vmax.f32 %v383_v63, 0.0  ;;  %v1958_v31 = vld [vmem:[#allocation6 + $0x68] sm:$0xff]  }
 0x117   :  { %v522_v39 = vpack.c.bf16 %v462_v34, %v458_v33  ;;  %v275_v40 = vpop.f32.mrb[4].mxu0  ;;  %v464_v1 = vmax.f32 %v385_v5, 0.0  ;;  %v1909_v33 = vld [vmem:[#allocation3 + $0x130] ss:$8 sps:$4 sm:$0xff]   ;;  %1670 = vmatprep.subr.bf16.mxu1 %v1958_v31 }
 0x118   :  { %v276_v43 = vadd.f32 %v275_v40, %v2262_v16  ;;  %v277_v44 = vpop.f32.mrb[5].mxu0  ;;  %v2287_v21 = vpack.c.bf16 %v463_v8, %v459_v62  ;;  %1671 = vmatpush3.bf16.msra.mxu1 %v1959_v48 }
 0x119   :  { %v278_v46 = vadd.f32 %v277_v44, %v2266_v17  ;;  %v279_v47 = vpop.f32.mrb[6].mxu0  ;;  %981 = vmatprep.mubr.bf16.mxu0 %v522_v39  ;;  %v2290_v24 = vpack.c.bf16 %v464_v1, %v460_v4  ;;  %v388_v25 = vpop.f32.mrb[4].mxu1  ;;  %v1914_v39 = vld [vmem:[#allocation3 + $0x144] ss:$8 sps:$4 sm:$0xff]  }
 0x11a   :  { %v280_v50 = vadd.f32 %v279_v47, %v2262_v16  ;;  %v281_v51 = vpop.f32.mrb[7].mxu0  ;;  %982 = vmatmul.mubr.bf16.vlgmr.msra.gmra.mrb[32].mxu0 %v521_v36  ;;  %v465_v59 = vmax.f32 %v276_v43, 0.0  ;;  %v389_v29 = vadd.f32 %v388_v25, %v2274_v37  ;;  %v390_v30 = vpop.f32.mrb[5].mxu1 }
 0x11b   :  { %v282_v55 = vadd.f32 %v281_v51, %v2266_v17  ;;  %1063 = vmatpush1.bf16.msra.mxu0 %v1900_v41  ;;  %v466_v2 = vmax.f32 %v278_v46, 0.0  ;;  %v391_v34 = vadd.f32 %v390_v30, %v2276_v42  ;;  %v392_v35 = vpop.f32.mrb[6].mxu1  ;;  %v1960_v51 = vld [vmem:[#allocation6 + $0x70] sm:$0xff]   ;;  %v1918_v30 = vld [vmem:[#allocation3 + $0x160] ss:$8 sps:$4 sm:$0xff]  }
 0x11c   :  { %v469_v60 = vmax.f32 %v280_v50, 0.0  ;;  %1064 = vmatprep.subr.bf16.mxu0 %v1905_v45  ;;  %v467_v40 = vmax.f32 %v389_v29, 0.0  ;;  %v393_v41 = vadd.f32 %v392_v35, %v2274_v37  ;;  %v394_v43 = vpop.f32.mrb[7].mxu1  ;;  %1672 = vmatprep.subr.bf16.mxu1 %v1960_v51 }
 0x11d   :  { %v470_v3 = vmax.f32 %v282_v55, 0.0  ;;  %v468_v46 = vmax.f32 %v391_v34, 0.0  ;;  %v395_v47 = vadd.f32 %v394_v43, %v2276_v42  ;;  %1673 = vmatpush3.bf16.msra.mxu1 %v1961_v0  ;;  %v1923_v34 = vld [vmem:[#allocation3 + $0x174] ss:$8 sps:$4 sm:$0xff]  }
 0x11e   :  { %v525_v7 = vpack.c.bf16 %v469_v60, %v465_v59  ;;  %v471_v50 = vmax.f32 %v393_v41, 0.0 }
 0x11f   :  { %v526_v10 = vpack.c.bf16 %v470_v3, %v466_v2  ;;  %v285_v11 = vpop.f32.mrb[8].mxu0  ;;  %1065 = vmatpush1.bf16.msra.mxu0 %v1903_v56  ;;  %v472_v55 = vmax.f32 %v395_v47, 0.0  ;;  %v1921_v47 = vld [vmem:[#allocation3 + $0x170] ss:$8 sps:$4 sm:$0xff]  }
 0x120   :  { %v286_v18 = vadd.f32 %v285_v11, %v2262_v16  ;;  %v287_v19 = vpop.f32.mrb[9].mxu0  ;;  %1066 = vmatprep.subr.bf16.mxu0 %v1908_v61  ;;  %v2299_v59 = vpack.c.bf16 %v471_v50, %v467_v40 }
 0x121   :  { %v288_v22 = vadd.f32 %v287_v19, %v2266_v17  ;;  %v289_v23 = vpop.f32.mrb[10].mxu0  ;;  %991 = vmatprep.mubr.bf16.mxu0 %v526_v10  ;;  %v2302_v62 = vpack.c.bf16 %v472_v55, %v468_v46  ;;  %v398_v63 = vpop.f32.mrb[8].mxu1 }
 0x122   :  { %v290_v27 = vadd.f32 %v289_v23, %v2262_v16  ;;  %v291_v28 = vpop.f32.mrb[11].mxu0  ;;  %992 = vmatmul.mubr.bf16.gmra.mrb[36].mxu0 %v525_v7  ;;  %v473_v36 = vmax.f32 %v286_v18, 0.0  ;;  %v399_v4 = vadd.f32 %v398_v63, %v2274_v37  ;;  %v400_v5 = vpop.f32.mrb[9].mxu1  ;;  %v1915_v7 = vld [vmem:[#allocation3 + $0x150] ss:$8 sps:$4 sm:$0xff]  }
 0x123   :  { %v292_v32 = vadd.f32 %v291_v28, %v2266_v17  ;;  %1067 = vmatpush1.bf16.msra.mxu0 %v1906_v12  ;;  %v474_v44 = vmax.f32 %v288_v22, 0.0  ;;  %v401_v8 = vadd.f32 %v400_v5, %v2276_v42  ;;  %v402_v9 = vpop.f32.mrb[10].mxu1  ;;  %v1920_v12 = vld [vmem:[#allocation3 + $0x164] ss:$8 sps:$4 sm:$0xff]  }
 0x124   :  { %v477_v38 = vmax.f32 %v290_v27, 0.0  ;;  %1068 = vmatprep.subr.bf16.mxu0 %v1911_v20  ;;  %v475_v1 = vmax.f32 %v399_v4, 0.0  ;;  %v403_v18 = vadd.f32 %v402_v9, %v2274_v37  ;;  %v404_v19 = vpop.f32.mrb[11].mxu1 }
 0x125   :  { %v478_v45 = vmax.f32 %v292_v32, 0.0  ;;  %v476_v23 = vmax.f32 %v401_v8, 0.0  ;;  %v405_v25 = vadd.f32 %v404_v19, %v2276_v42 }
 0x126   :  { %v529_v49 = vpack.c.bf16 %v477_v38, %v473_v36  ;;  %v479_v27 = vmax.f32 %v403_v18, 0.0 }
 0x127   :  { %v530_v52 = vpack.c.bf16 %v478_v45, %v474_v44  ;;  %v295_v53 = vpop.f32.mrb[12].mxu0  ;;  %1069 = vmatpush1.bf16.msra.mxu0 %v1909_v33  ;;  %v480_v31 = vmax.f32 %v405_v25, 0.0 }
 0x128   :  { %v296_v56 = vadd.f32 %v295_v53, %v2262_v16  ;;  %v297_v57 = vpop.f32.mrb[13].mxu0  ;;  %1070 = vmatprep.subr.bf16.mxu0 %v1914_v39  ;;  %v2311_v35 = vpack.c.bf16 %v479_v27, %v475_v1 }
 0x129   :  { %v298_v60 = vadd.f32 %v297_v57, %v2266_v17  ;;  %v299_v61 = vpop.f32.mrb[14].mxu0  ;;  %1001 = vmatprep.mubr.bf16.mxu0 %v530_v52  ;;  %v2314_v39 = vpack.c.bf16 %v480_v31, %v476_v23  ;;  %v408_v40 = vpop.f32.mrb[12].mxu1  ;;  %v1926_v52 = vld [vmem:[#allocation3 + $0x184] ss:$8 sps:$4 sm:$0xff]   ;;  %v1927_v23 = vld [vmem:[#allocation3 + $0x190] ss:$8 sps:$4 sm:$0xff]  }
 0x12a   :  { %v300_v2 = vadd.f32 %v299_v61, %v2262_v16  ;;  %v301_v3 = vpop.f32.mrb[15].mxu0  ;;  %1002 = vmatmul.mubr.bf16.gmra.mrb[40].mxu0 %v529_v49  ;;  %v481_v10 = vmax.f32 %v296_v56, 0.0  ;;  %v409_v44 = vadd.f32 %v408_v40, %v2274_v37  ;;  %v410_v45 = vpop.f32.mrb[13].mxu1 }
 0x12b   :  { %v302_v6 = vadd.f32 %v301_v3, %v2266_v17  ;;  %1071 = vmatpush1.bf16.msra.mxu0 %v1912_v54  ;;  %v482_v20 = vmax.f32 %v298_v60, 0.0  ;;  %v411_v48 = vadd.f32 %v410_v45, %v2276_v42  ;;  %v412_v49 = vpop.f32.mrb[14].mxu1  ;;  %v1924_v3 = vld [vmem:[#allocation3 + $0x180] ss:$8 sps:$4 sm:$0xff]  }
 0x12c   :  { %v485_v11 = vmax.f32 %v300_v2, 0.0  ;;  %1072 = vmatprep.subr.bf16.mxu0 %v1917_v58  ;;  %v483_v53 = vmax.f32 %v409_v44, 0.0  ;;  %v413_v54 = vadd.f32 %v412_v49, %v2274_v37  ;;  %v414_v55 = vpop.f32.mrb[15].mxu1  ;;  %v1930_v45 = vld [vmem:[#allocation3 + $0x1a0] ss:$8 sps:$4 sm:$0xff]  }
 0x12d   :  { %v486_v22 = vmax.f32 %v302_v6, 0.0  ;;  %v484_v58 = vmax.f32 %v411_v48, 0.0  ;;  %v415_v60 = vadd.f32 %v414_v55, %v2276_v42  ;;  %v1935_v49 = vld [vmem:[#allocation3 + $0x1b4] ss:$8 sps:$4 sm:$0xff]  }
 0x12e   :  { %v533_v26 = vpack.c.bf16 %v485_v11, %v481_v10  ;;  %v487_v63 = vmax.f32 %v413_v54, 0.0 }
 0x12f   :  { %v534_v28 = vpack.c.bf16 %v486_v22, %v482_v20  ;;  %v305_v29 = vpop.f32.mrb[16].mxu0  ;;  %1073 = vmatpush1.bf16.msra.mxu0 %v1915_v7  ;;  %v488_v4 = vmax.f32 %v415_v60, 0.0  ;;  %v1929_v7 = vld [vmem:[#allocation3 + $0x194] ss:$8 sps:$4 sm:$0xff]  }
 0x130   :  { %v306_v32 = vadd.f32 %v305_v29, %v2262_v16  ;;  %v307_v33 = vpop.f32.mrb[17].mxu0  ;;  %1074 = vmatprep.subr.bf16.mxu0 %v1920_v12  ;;  %v2323_v8 = vpack.c.bf16 %v487_v63, %v483_v53  ;;  %v1932_v29 = vld [vmem:[#allocation3 + $0x1a4] ss:$8 sps:$4 sm:$0xff]  }
 0x131   :  { %v308_v36 = vadd.f32 %v307_v33, %v2266_v17  ;;  %v309_v38 = vpop.f32.mrb[18].mxu0  ;;  %1011 = vmatprep.mubr.bf16.mxu0 %v534_v28  ;;  %v2326_v11 = vpack.c.bf16 %v488_v4, %v484_v58  ;;  %v418_v12 = vpop.f32.mrb[16].mxu1  ;;  %v1938_v4 = vld [vmem:[#allocation3 + $0x1c4] ss:$8 sps:$4 sm:$0xff]  }
 0x132   :  { %v310_v41 = vadd.f32 %v309_v38, %v2262_v16  ;;  %v311_v43 = vpop.f32.mrb[19].mxu0  ;;  %1012 = vmatmul.mubr.bf16.gmra.mrb[44].mxu0 %v533_v26  ;;  %v489_v50 = vmax.f32 %v306_v32, 0.0  ;;  %v419_v19 = vadd.f32 %v418_v12, %v2274_v37  ;;  %v420_v20 = vpop.f32.mrb[17].mxu1 }
 0x133   :  { %v312_v46 = vadd.f32 %v311_v43, %v2266_v17  ;;  %1075 = vmatpush1.bf16.msra.mxu0 %v1918_v30  ;;  %v490_v56 = vmax.f32 %v308_v36, 0.0  ;;  %v421_v25 = vadd.f32 %v420_v20, %v2276_v42  ;;  %v422_v26 = vpop.f32.mrb[18].mxu1 }
 0x134   :  { %v493_v51 = vmax.f32 %v310_v41, 0.0  ;;  %1076 = vmatprep.subr.bf16.mxu0 %v1923_v34  ;;  %v491_v30 = vmax.f32 %v419_v19, 0.0  ;;  %v423_v31 = vadd.f32 %v422_v26, %v2274_v37  ;;  %v424_v32 = vpop.f32.mrb[19].mxu1 }
 0x135   :  { %v494_v57 = vmax.f32 %v312_v46, 0.0  ;;  %v492_v36 = vmax.f32 %v421_v25, 0.0  ;;  %v425_v38 = vadd.f32 %v424_v32, %v2276_v42 }
 0x136   :  { %v537_v61 = vpack.c.bf16 %v493_v51, %v489_v50  ;;  %v495_v41 = vmax.f32 %v423_v31, 0.0 }
 0x137   :  { %v538_v0 = vpack.c.bf16 %v494_v57, %v490_v56  ;;  %v315_v2 = vpop.f32.mrb[20].mxu0  ;;  %1077 = vmatpush1.bf16.msra.mxu0 %v1921_v47  ;;  %v496_v46 = vmax.f32 %v425_v38, 0.0 }
 0x138   :  { %v316_v5 = vadd.f32 %v315_v2, %v2262_v16  ;;  %v317_v6 = vpop.f32.mrb[21].mxu0  ;;  %1078 = vmatprep.subr.bf16.mxu0 %v1926_v52  ;;  %v2335_v50 = vpack.c.bf16 %v495_v41, %v491_v30 }
 0x139   :  { %v318_v9 = vadd.f32 %v317_v6, %v2266_v17  ;;  %v319_v10 = vpop.f32.mrb[22].mxu0  ;;  %1021 = vmatprep.mubr.bf16.mxu0 %v538_v0  ;;  %v2338_v53 = vpack.c.bf16 %v496_v46, %v492_v36  ;;  %v428_v54 = vpop.f32.mrb[20].mxu1 }
 0x13a   :  { %v320_v1 = vadd.f32 %v319_v10, %v2262_v16  ;;  %v321_v18 = vpop.f32.mrb[23].mxu0  ;;  %1022 = vmatmul.mubr.bf16.gmra.mrb[48].mxu0 %v537_v61  ;;  %v497_v27 = vmax.f32 %v316_v5, 0.0  ;;  %v429_v57 = vadd.f32 %v428_v54, %v2274_v37  ;;  %v430_v58 = vpop.f32.mrb[21].mxu1  ;;  %v1933_v61 = vld [vmem:[#allocation3 + $0x1b0] ss:$8 sps:$4 sm:$0xff]  }
 0x13b   :  { %v322_v22 = vadd.f32 %v321_v18, %v2266_v17  ;;  %1079 = vmatpush1.bf16.msra.mxu0 %v1924_v3  ;;  %v498_v33 = vmax.f32 %v318_v9, 0.0  ;;  %v431_v63 = vadd.f32 %v430_v58, %v2276_v42  ;;  %v432_v0 = vpop.f32.mrb[22].mxu1 }
 0x13c   :  { %v501_v28 = vmax.f32 %v320_v1, 0.0  ;;  %1080 = vmatprep.subr.bf16.mxu0 %v1929_v7  ;;  %v499_v5 = vmax.f32 %v429_v57, 0.0  ;;  %v433_v6 = vadd.f32 %v432_v0, %v2274_v37  ;;  %v434_v7 = vpop.f32.mrb[23].mxu1 }
 0x13d   :  { %v502_v34 = vmax.f32 %v322_v22, 0.0  ;;  %v500_v12 = vmax.f32 %v431_v63, 0.0  ;;  %v435_v1 = vadd.f32 %v434_v7, %v2276_v42  ;;  %v1947_v63 = vld [vmem:[#allocation3 + $0x1f4] ss:$8 sps:$4 sm:$0xff]  }
 0x13e   :  { %v541_v40 = vpack.c.bf16 %v501_v28, %v497_v27  ;;  %v503_v19 = vmax.f32 %v433_v6, 0.0  ;;  %v1941_v28 = vld [vmem:[#allocation3 + $0x1d4] ss:$8 sps:$4 sm:$0xff]   ;;  %v1945_v6 = vld [vmem:[#allocation3 + $0x1f0] ss:$8 sps:$4 sm:$0xff]  }
 0x13f   :  { %v542_v43 = vpack.c.bf16 %v502_v34, %v498_v33  ;;  %v325_v44 = vpop.f32.mrb[24].mxu0  ;;  %1081 = vmatpush1.bf16.msra.mxu0 %v1927_v23  ;;  %v1936_v23 = vld [vmem:[#allocation3 + $0x1c0] ss:$8 sps:$4 sm:$0xff]   ;;  %v504_v25 = vmax.f32 %v435_v1, 0.0 }
 0x140   :  { %v326_v47 = vadd.f32 %v325_v44, %v2262_v16  ;;  %v327_v48 = vpop.f32.mrb[25].mxu0  ;;  %1082 = vmatprep.subr.bf16.mxu0 %v1932_v29  ;;  %v2347_v29 = vpack.c.bf16 %v503_v19, %v499_v5 }
 0x141   :  { %v328_v51 = vadd.f32 %v327_v48, %v2266_v17  ;;  %v329_v52 = vpop.f32.mrb[26].mxu0  ;;  %1031 = vmatprep.mubr.bf16.mxu0 %v542_v43  ;;  %v544_v32 = vpack.c.bf16 %v504_v25, %v500_v12  ;;  %v438_v33 = vpop.f32.mrb[24].mxu1  ;;  %v1939_v43 = vld [vmem:[#allocation3 + $0x1d0] ss:$8 sps:$4 sm:$0xff]   ;;  %v1944_v48 = vld [vmem:[#allocation3 + $0x1e4] ss:$8 sps:$4 sm:$0xff]  }
 0x142   :  { %v330_v55 = vadd.f32 %v329_v52, %v2262_v16  ;;  %v331_v56 = vpop.f32.mrb[27].mxu0  ;;  %1032 = vmatmul.mubr.bf16.gmra.mrb[52].mxu0 %v541_v40  ;;  %v505_v2 = vmax.f32 %v326_v47, 0.0  ;;  %v439_v38 = vadd.f32 %v438_v33, %v2274_v37  ;;  %v440_v40 = vpop.f32.mrb[25].mxu1 }
 0x143   :  { %v332_v60 = vadd.f32 %v331_v56, %v2266_v17  ;;  %1083 = vmatpush1.bf16.msra.mxu0 %v1930_v45  ;;  %v506_v9 = vmax.f32 %v328_v51, 0.0  ;;  %v441_v44 = vadd.f32 %v440_v40, %v2276_v42  ;;  %v442_v45 = vpop.f32.mrb[26].mxu1 }
 0x144   :  { %v509_v3 = vmax.f32 %v330_v55, 0.0  ;;  %1084 = vmatprep.subr.bf16.mxu0 %v1935_v49  ;;  %v507_v49 = vmax.f32 %v439_v38, 0.0  ;;  %v443_v51 = vadd.f32 %v442_v45, %v2274_v37 }
 0x145   :  { %v510_v10 = vmax.f32 %v332_v60, 0.0  ;;  %v508_v55 = vmax.f32 %v441_v44, 0.0  ;;  %v1942_v60 = vld [vmem:[#allocation3 + $0x1e0] ss:$8 sps:$4 sm:$0xff]  }
 0x146   :  { %v545_v18 = vpack.c.bf16 %v509_v3, %v505_v2 }
 0x147   :  { %v546_v20 = vpack.c.bf16 %v510_v10, %v506_v9  ;;  %v335_v22 = vpop.f32.mrb[28].mxu0  ;;  %1085 = vmatpush1.bf16.msra.mxu0 %v1933_v61 }
 0x148   :  { %v336_v26 = vadd.f32 %v335_v22, %v2262_v16  ;;  %v337_v27 = vpop.f32.mrb[29].mxu0  ;;  %1086 = vmatprep.subr.bf16.mxu0 %v1938_v4 }
 0x149   :  { %v338_v30 = vadd.f32 %v337_v27, %v2266_v17  ;;  %v339_v31 = vpop.f32.mrb[30].mxu0  ;;  %1041 = vmatprep.mubr.bf16.mxu0 %v546_v20 }
 0x14a   :  { %v340_v34 = vadd.f32 %v339_v31, %v2262_v16  ;;  %v341_v36 = vpop.f32.mrb[31].mxu0  ;;  %1042 = vmatmul.mubr.bf16.gmra.mrb[56].mxu0 %v545_v18  ;;  %v513_v46 = vmax.f32 %v336_v26, 0.0  ;;  %v444_v16 = vpop.f32.mrb[27].mxu1 }
 0x14b   :  { %v342_v41 = vadd.f32 %v341_v36, %v2266_v17  ;;  %1087 = vmatpush1.bf16.msra.mxu0 %v1936_v23  ;;  %v514_v52 = vmax.f32 %v338_v30, 0.0  ;;  %v445_v56 = vadd.f32 %v444_v16, %v2276_v42  ;;  %v511_v17 = vmax.f32 %v443_v51, 0.0  ;;  %v448_v3 = vpop.f32.mrb[28].mxu1 }
 0x14c   :  { %v517_v47 = vmax.f32 %v340_v34, 0.0  ;;  %1088 = vmatprep.subr.bf16.mxu0 %v1941_v28  ;;  %v449_v4 = vadd.f32 %v448_v3, %v2274_v37  ;;  %v450_v5 = vpop.f32.mrb[29].mxu1 }
 0x14d   :  { %v518_v54 = vmax.f32 %v342_v41, 0.0  ;;  %v512_v61 = vmax.f32 %v445_v56, 0.0  ;;  %v547_v0 = vpack.c.bf16 %v511_v17, %v507_v49  ;;  %v451_v7 = vadd.f32 %v450_v5, %v2276_v42  ;;  %v452_v9 = vpop.f32.mrb[30].mxu1 }
 0x14e   :  { %v549_v57 = vpack.c.bf16 %v517_v47, %v513_v46  ;;  %v515_v10 = vmax.f32 %v449_v4, 0.0  ;;  %v453_v12 = vadd.f32 %v452_v9, %v2274_v37  ;;  %v454_v1 = vpop.f32.mrb[31].mxu1  ;;  %v1962_v37 = vld [vmem:[#allocation6 + $0x78] sm:$0xff]  }
 0x14f   :  { %v550_v58 = vpack.c.bf16 %v518_v54, %v514_v52  ;;  %1089 = vmatpush1.bf16.msra.mxu0 %v1939_v43  ;;  %v548_v2 = vpack.c.bf16 %v512_v61, %v508_v55  ;;  %v516_v18 = vmax.f32 %v451_v7, 0.0  ;;  %v455_v19 = vadd.f32 %v454_v1, %v2276_v42  ;;  %v1963_v42 = vld [vmem:[#allocation6 + $0x38] sm:$0xff]   ;;  %1674 = vmatprep.subr.bf16.mxu1 %v1962_v37 }
 0x150   :  { %1090 = vmatprep.subr.bf16.mxu0 %v1944_v48  ;;  %v519_v20 = vmax.f32 %v453_v12, 0.0  ;;  %1675 = vmatpush3.bf16.msra.mxu1 %v1963_v42 }
 0x151   :  { %1051 = vmatprep.mubr.bf16.mxu0 %v550_v58  ;;  %v520_v22 = vmax.f32 %v455_v19, 0.0 }
 0x152   :  { %1052 = vmatmul.mubr.bf16.gmra.mrb[60].mxu0 %v549_v57  ;;  %v551_v23 = vpack.c.bf16 %v519_v20, %v515_v10 }
 0x153   :  { %1091 = vmatpush1.bf16.msra.mxu0 %v1942_v60  ;;  %1094 = vmatprep.mubr.bf16.mxu0 %v2290_v24  ;;  %v552_v25 = vpack.c.bf16 %v520_v22, %v516_v18 }
 0x154   :  { %1092 = vmatprep.subr.bf16.mxu0 %v1947_v63 }
 0x157   :  { %1093 = vmatpush1.bf16.msra.mxu0 %v1945_v6 }
 0x15a   :  { %1095 = vmatmul.mubr.bf16.vlgmr.msra.gmra.mrb[32].mxu0 %v2287_v21  ;;  %v617_v21 = vld [vmem:[%s2463_s4] sm:$0x3] }
 0x15b   :  { %1104 = vmatprep.mubr.bf16.mxu0 %v2302_v62  ;;  %v2375_v24 = vrot.slane %v617_v21, %v2255_v14 }
 0x162   :  { %1105 = vmatmul.mubr.bf16.gmra.mrb[36].mxu0 %v2299_v59  ;;  %v2379_v59 = vrot.slane %v617_v21, %v112_v15 }
 0x163   :  { %1114 = vmatprep.mubr.bf16.mxu0 %v2314_v39 }
 0x16a   :  { %1115 = vmatmul.mubr.bf16.gmra.mrb[40].mxu0 %v2311_v35 }
 0x16b   :  { %1124 = vmatprep.mubr.bf16.mxu0 %v2326_v11 }
 0x172   :  { %1125 = vmatmul.mubr.bf16.gmra.mrb[44].mxu0 %v2323_v8 }
 0x173   :  { %1134 = vmatprep.mubr.bf16.mxu0 %v2338_v53 }
 0x17a   :  { %1135 = vmatmul.mubr.bf16.gmra.mrb[48].mxu0 %v2335_v50 }
 0x17b   :  { %1144 = vmatprep.mubr.bf16.mxu0 %v544_v32 }
 0x182   :  { %1145 = vmatmul.mubr.bf16.gmra.mrb[52].mxu0 %v2347_v29 }
 0x183   :  { %1154 = vmatprep.mubr.bf16.mxu0 %v548_v2 }
 0x18a   :  { %1155 = vmatmul.mubr.bf16.gmra.mrb[56].mxu0 %v547_v0 }
 0x18b   :  { %1164 = vmatprep.mubr.bf16.mxu0 %v552_v25 }
 0x192   :  { %1165 = vmatmul.mubr.bf16.gmra.mrb[60].mxu0 %v551_v23 }
 0x22d   :  { %v1096_v62 = vpop.f32.mrb[32].mxu0 }
 0x22e   :  { %v1753_v35 = vadd.f32 %v1096_v62, %v2375_v24  ;;  %v1098_v39 = vpop.f32.mrb[33].mxu0 }
 0x22f   :  { %v1754_v8 = vadd.f32 %v1098_v39, %v2379_v59  ;;  %v1100_v11 = vpop.f32.mrb[34].mxu0 }
 0x230   :  { %v1755_v50 = vadd.f32 %v1100_v11, %v2375_v24  ;;  %v1102_v53 = vpop.f32.mrb[35].mxu0  ;;  %v1175_v27 = vmax.f32 %v1753_v35, 0.0 }
 0x231   :  { %v1756_v26 = vadd.f32 %v1102_v53, %v2379_v59  ;;  %v1176_v29 = vmax.f32 %v1754_v8, 0.0 }
 0x232   :  { %v1177_v28 = vmax.f32 %v1755_v50, 0.0 }
 0x233   :  { %v1178_v30 = vmax.f32 %v1756_v26, 0.0 }
 0x234   :  { %v1207_v31 = vpack.c.bf16 %v1177_v28, %v1175_v27 }
 0x235   :  { %v1208_v13 = vpack.c.bf16 %v1178_v30, %v1176_v29  ;;  %v1106_v15 = vpop.f32.mrb[36].mxu0 }
 0x236   :  { %v1757_v32 = vadd.f32 %v1106_v15, %v2375_v24  ;;  %v1108_v33 = vpop.f32.mrb[37].mxu0 }
 0x237   :  { %v1758_v34 = vadd.f32 %v1108_v33, %v2379_v59  ;;  %v1110_v36 = vpop.f32.mrb[38].mxu0  ;;  %1390 = vmatprep.mubr.bf16.mxu1 %v1208_v13 }
 0x238   :  { %v1759_v38 = vadd.f32 %v1110_v36, %v2375_v24  ;;  %v1112_v40 = vpop.f32.mrb[39].mxu0  ;;  %1391 = vmatmul.mubr.bf16.vlgmr.msra.gmra.mrb[32].mxu1 %v1207_v31  ;;  %v1179_v43 = vmax.f32 %v1757_v32, 0.0 }
 0x239   :  { %v1760_v41 = vadd.f32 %v1112_v40, %v2379_v59  ;;  %v1180_v45 = vmax.f32 %v1758_v34, 0.0 }
 0x23a   :  { %v1181_v44 = vmax.f32 %v1759_v38, 0.0 }
 0x23b   :  { %v1182_v46 = vmax.f32 %v1760_v41, 0.0 }
 0x23c   :  { %v1209_v47 = vpack.c.bf16 %v1181_v44, %v1179_v43 }
 0x23d   :  { %v1210_v48 = vpack.c.bf16 %v1182_v46, %v1180_v45  ;;  %v1116_v49 = vpop.f32.mrb[40].mxu0 }
 0x23e   :  { %v1761_v51 = vadd.f32 %v1116_v49, %v2375_v24  ;;  %v1118_v16 = vpop.f32.mrb[41].mxu0 }
 0x23f   :  { %v1762_v52 = vadd.f32 %v1118_v16, %v2379_v59  ;;  %v1120_v54 = vpop.f32.mrb[42].mxu0  ;;  %1398 = vmatprep.mubr.bf16.mxu1 %v1210_v48 }
 0x240   :  { %v1763_v55 = vadd.f32 %v1120_v54, %v2375_v24  ;;  %v1122_v56 = vpop.f32.mrb[43].mxu0  ;;  %1399 = vmatmul.mubr.bf16.gmra.mrb[36].mxu1 %v1209_v47  ;;  %v1183_v17 = vmax.f32 %v1761_v51, 0.0 }
 0x241   :  { %v1764_v57 = vadd.f32 %v1122_v56, %v2379_v59  ;;  %v1184_v60 = vmax.f32 %v1762_v52, 0.0 }
 0x242   :  { %v1185_v58 = vmax.f32 %v1763_v55, 0.0 }
 0x243   :  { %v1186_v61 = vmax.f32 %v1764_v57, 0.0 }
 0x244   :  { %v1211_v63 = vpack.c.bf16 %v1185_v58, %v1183_v17 }
 0x245   :  { %v1212_v0 = vpack.c.bf16 %v1186_v61, %v1184_v60  ;;  %v1126_v2 = vpop.f32.mrb[44].mxu0 }
 0x246   :  { %v1765_v3 = vadd.f32 %v1126_v2, %v2375_v24  ;;  %v1128_v4 = vpop.f32.mrb[45].mxu0 }
 0x247   :  { %v1766_v5 = vadd.f32 %v1128_v4, %v2379_v59  ;;  %v1130_v6 = vpop.f32.mrb[46].mxu0  ;;  %1406 = vmatprep.mubr.bf16.mxu1 %v1212_v0 }
 0x248   :  { %v1767_v7 = vadd.f32 %v1130_v6, %v2375_v24  ;;  %v1132_v9 = vpop.f32.mrb[47].mxu0  ;;  %1407 = vmatmul.mubr.bf16.gmra.mrb[40].mxu1 %v1211_v63  ;;  %v1187_v12 = vmax.f32 %v1765_v3, 0.0 }
 0x249   :  { %v1768_v10 = vadd.f32 %v1132_v9, %v2379_v59  ;;  %v1188_v18 = vmax.f32 %v1766_v5, 0.0 }
 0x24a   :  { %v1189_v1 = vmax.f32 %v1767_v7, 0.0 }
 0x24b   :  { %v1190_v19 = vmax.f32 %v1768_v10, 0.0 }
 0x24c   :  { %v1213_v20 = vpack.c.bf16 %v1189_v1, %v1187_v12  ;;  %v2043_v1 = vmov 0.0  }
 0x24d   :  { %v1214_v22 = vpack.c.bf16 %v1190_v19, %v1188_v18  ;;  %v1136_v23 = vpop.f32.mrb[48].mxu0  ;;  %1733 = vmatprep.subr.bf16.mxu1 %v2043_v1  ;;  %v1480_v18 = vld [vmem:[#allocation2] sm:$0x1] }
 0x24e   :  { %v1769_v25 = vadd.f32 %v1136_v23, %v2375_v24  ;;  %v1138_v37 = vpop.f32.mrb[49].mxu0  ;;  %1483 = vperm.xlu0 %1827, %v1480_v18  }
 0x24f   :  { %v1770_v42 = vadd.f32 %v1138_v37, %v2379_v59  ;;  %v1140_v21 = vpop.f32.mrb[50].mxu0  ;;  %1414 = vmatprep.mubr.bf16.mxu1 %v1214_v22 }
 0x250   :  { %v1771_v62 = vadd.f32 %v1140_v21, %v2375_v24  ;;  %v1142_v35 = vpop.f32.mrb[51].mxu0  ;;  %1415 = vmatmul.mubr.bf16.gmra.mrb[44].mxu1 %v1213_v20  ;;  %v1191_v8 = vmax.f32 %v1769_v25, 0.0 }
 0x251   :  { %v1772_v39 = vadd.f32 %v1142_v35, %v2379_v59  ;;  %v1192_v50 = vmax.f32 %v1770_v42, 0.0 }
 0x252   :  { %v1193_v11 = vmax.f32 %v1771_v62, 0.0 }
 0x253   :  { %v1194_v53 = vmax.f32 %v1772_v39, 0.0 }
 0x254   :  { %v1215_v26 = vpack.c.bf16 %v1193_v11, %v1191_v8 }
 0x255   :  { %v1216_v27 = vpack.c.bf16 %v1194_v53, %v1192_v50  ;;  %v1146_v28 = vpop.f32.mrb[52].mxu0 }
 0x256   :  { %v1773_v29 = vadd.f32 %v1146_v28, %v2375_v24  ;;  %v1148_v30 = vpop.f32.mrb[53].mxu0 }
 0x257   :  { %v1774_v31 = vadd.f32 %v1148_v30, %v2379_v59  ;;  %v1150_v13 = vpop.f32.mrb[54].mxu0  ;;  %1422 = vmatprep.mubr.bf16.mxu1 %v1216_v27 }
 0x258   :  { %v1775_v15 = vadd.f32 %v1150_v13, %v2375_v24  ;;  %v1152_v32 = vpop.f32.mrb[55].mxu0  ;;  %1423 = vmatmul.mubr.bf16.gmra.mrb[48].mxu1 %v1215_v26  ;;  %v1195_v34 = vmax.f32 %v1773_v29, 0.0 }
 0x259   :  { %v1776_v33 = vadd.f32 %v1152_v32, %v2379_v59  ;;  %v1196_v38 = vmax.f32 %v1774_v31, 0.0 }
 0x25a   :  { %v1197_v36 = vmax.f32 %v1775_v15, 0.0 }
 0x25b   :  { %v1198_v40 = vmax.f32 %v1776_v33, 0.0 }
 0x25c   :  { %v1217_v41 = vpack.c.bf16 %v1197_v36, %v1195_v34 }
 0x25d   :  { %v1218_v43 = vpack.c.bf16 %v1198_v40, %v1196_v38  ;;  %v1156_v44 = vpop.f32.mrb[56].mxu0 }
 0x25e   :  { %v1777_v45 = vadd.f32 %v1156_v44, %v2375_v24  ;;  %v1158_v46 = vpop.f32.mrb[57].mxu0 }
 0x25f   :  { %v1778_v47 = vadd.f32 %v1158_v46, %v2379_v59  ;;  %v1160_v48 = vpop.f32.mrb[58].mxu0  ;;  %1430 = vmatprep.mubr.bf16.mxu1 %v1218_v43 }
 0x260   :  { %v1779_v49 = vadd.f32 %v1160_v48, %v2375_v24  ;;  %v1162_v51 = vpop.f32.mrb[59].mxu0  ;;  %1431 = vmatmul.mubr.bf16.gmra.mrb[52].mxu1 %v1217_v41  ;;  %v1199_v52 = vmax.f32 %v1777_v45, 0.0 }
 0x261   :  { %v1780_v16 = vadd.f32 %v1162_v51, %v2379_v59  ;;  %v1200_v55 = vmax.f32 %v1778_v47, 0.0 }
 0x262   :  { %v1201_v54 = vmax.f32 %v1779_v49, 0.0 }
 0x263   :  { %v1202_v56 = vmax.f32 %v1780_v16, 0.0 }
 0x264   :  { %v1219_v57 = vpack.c.bf16 %v1201_v54, %v1199_v52 }
 0x265   :  { %v1220_v17 = vpack.c.bf16 %v1202_v56, %v1200_v55  ;;  %v1166_v58 = vpop.f32.mrb[60].mxu0 }
 0x266   :  { %v1781_v60 = vadd.f32 %v1166_v58, %v2375_v24  ;;  %v1168_v61 = vpop.f32.mrb[61].mxu0 }
 0x267   :  { %v1782_v63 = vadd.f32 %v1168_v61, %v2379_v59  ;;  %v1170_v0 = vpop.f32.mrb[62].mxu0  ;;  %1438 = vmatprep.mubr.bf16.mxu1 %v1220_v17 }
 0x268   :  { %v1783_v2 = vadd.f32 %v1170_v0, %v2375_v24  ;;  %v1172_v3 = vpop.f32.mrb[63].mxu0  ;;  %1439 = vmatmul.mubr.bf16.gmra.mrb[56].mxu1 %v1219_v57  ;;  %v1203_v5 = vmax.f32 %v1781_v60, 0.0 }
 0x269   :  { %v1784_v4 = vadd.f32 %v1172_v3, %v2379_v59  ;;  %v1204_v7 = vmax.f32 %v1782_v63, 0.0  ;;  %v2418_v59 = vld [vmem:[%s2465_s6] ss:$0 sm:$0xff] }
 0x26a   :  { %v1205_v6 = vmax.f32 %v1783_v2, 0.0 }
 0x26b   :  { %v1206_v9 = vmax.f32 %v1784_v4, 0.0 }
 0x26c   :  { %v1221_v10 = vpack.c.bf16 %v1205_v6, %v1203_v5 }
 0x26d   :  { %v1222_v12 = vpack.c.bf16 %v1206_v9, %v1204_v7 }
 0x26f   :  { %1446 = vmatprep.mubr.bf16.mxu1 %v1222_v12 }
 0x270   :  { %1447 = vmatmul.mubr.bf16.gmra.mrb[60].mxu1 %v1221_v10 }
 0x271   :  { %1749 = vmatprep.mubr.msk.bf16.mxu1 %vm2044_vm1, %v2043_v1 }
 0x30b   :  { %v1676_v24 = vpop.f32.mrb[32].mxu1 }
 0x30c   :  { %v1677_v19 = vpop.f32.mrb[33].mxu1 }
 0x30d   :  { %v1678_v20 = vadd.f32 %v1677_v19, %v1676_v24  ;;  %v1679_v22 = vpop.f32.mrb[34].mxu1 }
 0x30e   :  { %v1680_v23 = vpop.f32.mrb[35].mxu1 }
 0x30f   :  { %v1393_v25 = vadd.f32 %v1678_v20, %v2418_v59  ;;  %v1681_v37 = vadd.f32 %v1680_v23, %v1679_v22 }
 0x311   :  { %v1396_v42 = vadd.f32 %v1681_v37, %v2418_v59  ;;  %v1455_v21 = vmax.f32 %v1393_v25, 0.0 }
 0x313   :  { %v1456_v62 = vmax.f32 %v1396_v42, 0.0  ;;  %v1682_v35 = vpop.f32.mrb[36].mxu1 }
 0x314   :  { %v1683_v39 = vpop.f32.mrb[37].mxu1 }
 0x315   :  { %v1472_v8 = vpack.c.bf16 %v1456_v62, %v1455_v21  ;;  %v1684_v11 = vadd.f32 %v1683_v39, %v1682_v35  ;;  %v1685_v50 = vpop.f32.mrb[38].mxu1 }
 0x316   :  { %v1686_v53 = vpop.f32.mrb[39].mxu1 }
 0x317   :  { %v1401_v26 = vadd.f32 %v1684_v11, %v2418_v59  ;;  %v1687_v27 = vadd.f32 %v1686_v53, %v1685_v50  ;;  %1734 = vmatpush3.bf16.xpose.msra.mxu1 %v1472_v8 }
 0x318   :  { %1735 = vmatprep.subr.bf16.mxu1 %v2043_v1 }
 0x319   :  { %v1404_v28 = vadd.f32 %v1687_v27, %v2418_v59  ;;  %v1457_v29 = vmax.f32 %v1401_v26, 0.0 }
 0x31b   :  { %v1458_v30 = vmax.f32 %v1404_v28, 0.0  ;;  %v1688_v31 = vpop.f32.mrb[40].mxu1 }
 0x31c   :  { %v1689_v13 = vpop.f32.mrb[41].mxu1 }
 0x31d   :  { %v1473_v15 = vpack.c.bf16 %v1458_v30, %v1457_v29  ;;  %v1690_v32 = vadd.f32 %v1689_v13, %v1688_v31  ;;  %v1691_v33 = vpop.f32.mrb[42].mxu1 }
 0x31e   :  { %v1692_v34 = vpop.f32.mrb[43].mxu1 }
 0x31f   :  { %v1409_v36 = vadd.f32 %v1690_v32, %v2418_v59  ;;  %v1693_v38 = vadd.f32 %v1692_v34, %v1691_v33  ;;  %1736 = vmatpush3.bf16.xpose.msra.mxu1 %v1473_v15 }
 0x320   :  { %1737 = vmatprep.subr.bf16.mxu1 %v2043_v1 }
 0x321   :  { %v1412_v40 = vadd.f32 %v1693_v38, %v2418_v59  ;;  %v1459_v41 = vmax.f32 %v1409_v36, 0.0  ;;  %v1471_v36 = vld [vmem:[%s2466_s7] sm:$0x1]  ;;  %v1484_v38 = vpop.permute.xlu0 %1483 }
 0x323   :  { %v1460_v43 = vmax.f32 %v1412_v40, 0.0  ;;  %v1694_v44 = vpop.f32.mrb[44].mxu1  ;;  %v1489_v40 = vrot.slane %v1484_v38, %v2255_v14 }
 0x324   :  { %v1695_v45 = vpop.f32.mrb[45].mxu1 }
 0x325   :  { %v1474_v46 = vpack.c.bf16 %v1460_v43, %v1459_v41  ;;  %v1696_v47 = vadd.f32 %v1695_v45, %v1694_v44  ;;  %v1697_v48 = vpop.f32.mrb[46].mxu1 }
 0x326   :  { %v1698_v49 = vpop.f32.mrb[47].mxu1 }
 0x327   :  { %v1417_v51 = vadd.f32 %v1696_v47, %v2418_v59  ;;  %v1699_v16 = vadd.f32 %v1698_v49, %v1697_v48  ;;  %1738 = vmatpush3.bf16.xpose.msra.mxu1 %v1474_v46 }
 0x328   :  { %1739 = vmatprep.subr.bf16.mxu1 %v2043_v1 }
 0x329   :  { %v1420_v52 = vadd.f32 %v1699_v16, %v2418_v59  ;;  %v1461_v54 = vmax.f32 %v1417_v51, 0.0 }
 0x32b   :  { %v1462_v55 = vmax.f32 %v1420_v52, 0.0  ;;  %v1700_v56 = vpop.f32.mrb[48].mxu1 }
 0x32c   :  { %v1701_v57 = vpop.f32.mrb[49].mxu1 }
 0x32d   :  { %v1475_v17 = vpack.c.bf16 %v1462_v55, %v1461_v54  ;;  %v1702_v58 = vadd.f32 %v1701_v57, %v1700_v56  ;;  %v1703_v60 = vpop.f32.mrb[50].mxu1 }
 0x32e   :  { %v1704_v61 = vpop.f32.mrb[51].mxu1 }
 0x32f   :  { %v1425_v63 = vadd.f32 %v1702_v58, %v2418_v59  ;;  %v1705_v0 = vadd.f32 %v1704_v61, %v1703_v60  ;;  %1740 = vmatpush3.bf16.xpose.msra.mxu1 %v1475_v17 }
 0x330   :  { %1741 = vmatprep.subr.bf16.mxu1 %v2043_v1 }
 0x331   :  { %v1428_v2 = vadd.f32 %v1705_v0, %v2418_v59  ;;  %v1463_v3 = vmax.f32 %v1425_v63, 0.0 }
 0x333   :  { %v1464_v4 = vmax.f32 %v1428_v2, 0.0  ;;  %v1706_v5 = vpop.f32.mrb[52].mxu1 }
 0x334   :  { %v1707_v6 = vpop.f32.mrb[53].mxu1 }
 0x335   :  { %v1476_v7 = vpack.c.bf16 %v1464_v4, %v1463_v3  ;;  %v1708_v9 = vadd.f32 %v1707_v6, %v1706_v5  ;;  %v1709_v10 = vpop.f32.mrb[54].mxu1 }
 0x336   :  { %v1710_v12 = vpop.f32.mrb[55].mxu1 }
 0x337   :  { %v1433_v18 = vadd.f32 %v1708_v9, %v2418_v59  ;;  %v1711_v24 = vadd.f32 %v1710_v12, %v1709_v10  ;;  %1742 = vmatpush3.bf16.xpose.msra.mxu1 %v1476_v7 }
 0x338   :  { %1743 = vmatprep.subr.bf16.mxu1 %v2043_v1 }
 0x339   :  { %v1436_v19 = vadd.f32 %v1711_v24, %v2418_v59  ;;  %v1465_v20 = vmax.f32 %v1433_v18, 0.0 }
 0x33b   :  { %v1466_v22 = vmax.f32 %v1436_v19, 0.0  ;;  %v1712_v23 = vpop.f32.mrb[56].mxu1 }
 0x33c   :  { %v1713_v25 = vpop.f32.mrb[57].mxu1 }
 0x33d   :  { %v1477_v37 = vpack.c.bf16 %v1466_v22, %v1465_v20  ;;  %v1714_v42 = vadd.f32 %v1713_v25, %v1712_v23  ;;  %v1715_v21 = vpop.f32.mrb[58].mxu1 }
 0x33e   :  { %v1716_v62 = vpop.f32.mrb[59].mxu1 }
 0x33f   :  { %v1441_v35 = vadd.f32 %v1714_v42, %v2418_v59  ;;  %v1717_v39 = vadd.f32 %v1716_v62, %v1715_v21  ;;  %1744 = vmatpush3.bf16.xpose.msra.mxu1 %v1477_v37 }
 0x340   :  { %1745 = vmatprep.subr.bf16.mxu1 %v2043_v1 }
 0x341   :  { %v1444_v8 = vadd.f32 %v1717_v39, %v2418_v59  ;;  %v1467_v11 = vmax.f32 %v1441_v35, 0.0 }
 0x343   :  { %v1468_v50 = vmax.f32 %v1444_v8, 0.0  ;;  %v1718_v53 = vpop.f32.mrb[60].mxu1 }
 0x344   :  { %v1719_v26 = vpop.f32.mrb[61].mxu1 }
 0x345   :  { %v1478_v27 = vpack.c.bf16 %v1468_v50, %v1467_v11  ;;  %v1720_v28 = vadd.f32 %v1719_v26, %v1718_v53  ;;  %v1721_v29 = vpop.f32.mrb[62].mxu1 }
 0x346   :  { %v1722_v30 = vpop.f32.mrb[63].mxu1 }
 0x347   :  { %v1449_v31 = vadd.f32 %v1720_v28, %v2418_v59  ;;  %v1723_v13 = vadd.f32 %v1722_v30, %v1721_v29  ;;  %1746 = vmatpush3.bf16.xpose.msra.mxu1 %v1478_v27 }
 0x348   :  { %1747 = vmatprep.subr.bf16.mxu1 %v2043_v1 }
 0x349   :  { %v1452_v15 = vadd.f32 %v1723_v13, %v2418_v59  ;;  %v1469_v32 = vmax.f32 %v1449_v31, 0.0 }
 0x34b   :  { %v1470_v33 = vmax.f32 %v1452_v15, 0.0 }
 0x34d   :  { %v1479_v34 = vpack.c.bf16 %v1470_v33, %v1469_v32 }
 0x34f   :  { %1748 = vmatpush3.bf16.xpose.msra.mxu1 %v1479_v34 }
 0x356   :  { %1750 = vmatmul.mubr.bf16.vlgmr.msra.gmra.mrb[64].mxu1 %v1471_v36 }
 0x429   :  { %v1524_v41 = vpop.f32.mrb[64].mxu1 }
 0x42a   :  { %v1525_v43 = vadd.f32 %v1524_v41, %v1489_v40  ;;  %v1751_v44 = vpop.f32.mrb[65].mxu1 }
 0x42b   :  { %v1527_v1 = vpop.f32.mrb[66].mxu1 }
 0x42c   :  { %1530 = vst [vmem:[#allocation8] sm:$0x1] %v1525_v43  ;;  %v1752_v59 = vpop.f32.mrb[67].mxu1 }
 0x42d   :  { %2019 = shalt.err (!%p2016_p6)
}
 0x42e   :  { %s2020_s15 = scalar_lea.hbm %s2468_s9, 16 }
 0x42f   :  { %p2021_p7 = scmp.ne.s32.totalorder %s2468_s9, %s2020_s15  ;;  %p2024_p8 = scmp.lt.u32.totalorder %s2020_s15, %s2468_s9 }
 0x431   :  { %p2026_p9 = pnand %p2024_p8, %p2021_p7 }
 0x433   :  { %2029 = shalt.err (!%p2026_p9)
}
 0x434   :  { %1540 = dma.vmem_to_hbm [thread:$0]  %s1538_s13, 16, %s2468_s9, [#allocation5]  }
 0x435   :  { %2034 = dma.done.wait [#allocation5], 16  }
 0x436   :  { %2035 = vsyncadd [#allocation5], 4294967280 }
 0x437   :  { %1544 = vsyncpa [#allocation4], 1 }
 0x438   :  { %1545 = vsyncpa [#allocation7], 1 }
 0x439   :  { %1546 = vsyncpa [#allocation5], 1 }

</bundles_post_ra>
